<compile_context>
chip_gen: v5e
topology: v5e:2x2
jax: 0.10.0
libtpu: 0.0.40
codegen_flags: <defaults>
</compile_context>

<pallas_src>
import jax
import jax.numpy as jnp
from jax import lax
from jax.experimental import pallas as pl
from jax.experimental.pallas import tpu as pltpu

_LANE = 128


def _mlp_kernel(x_ref, w1_ref, b1_ref, w2_ref, b2_ref, w3_ref, b3_ref, o_ref):
    # x_ref : [Bt, F]   float32, natural layout (streamed)
    # w1_ref: [H1, F]   compute dtype (resident)     b1_ref: [H1, 1] f32
    # w2_ref: [H2, H1]  compute dtype (resident)     b2_ref: [H2, 1] f32
    # w3_ref: [H2, 1]   f32 column (resident)        b3_ref: [1, 1]  f32
    # o_ref : [1, Bt]   f32 (lane-dense output block)
    cd = w1_ref.dtype
    x_cd = x_ref[...].astype(cd)                      # VPU cast, in-kernel

    # h1^T = W1^T @ x^T : contract F on both operands -> [H1, Bt].
    h1 = lax.dot_general(
        w1_ref[...], x_cd, (((1,), (1,)), ((), ())),
        preferred_element_type=jnp.float32) + b1_ref[...]
    h1 = jnp.maximum(h1, 0.0)                         # f32 elementwise (v5e-safe)

    # h2^T = W2^T @ relu(h1^T) -> [H2, Bt].
    h2 = jnp.dot(w2_ref[...], h1.astype(cd),
                 preferred_element_type=jnp.float32) + b2_ref[...]
    h2 = jnp.maximum(h2, 0.0)

    # Layer 3 has a single output feature: keep it off the MXU (an M=1 pass per
    # lane chunk would be ~1/3 of all vmatmul pushes for 0.8% of the FLOPs).
    # VPU broadcast-multiply + sublane reduction, all in f32.
    o_ref[...] = jnp.sum(w3_ref[...] * h2, axis=0, keepdims=True) + b3_ref[...]


def _choose_batch_tile(batch: int, cap: int = 8192) -> int:
    """Pick the lane-aligned batch tile.

    `cap` is the sweep parameter (review: 8192-16384 amortizes the ~0.35 us
    per-grid-step overhead; keep the per-step footprint <= ~24 MiB on v7x's
    64 MiB VMEM; v5e/v6e can go larger).  When the batch allows it, prefer a
    grid of >= 2 (ideally even) steps so dimension_semantics=("parallel",)
    can split work across v7x's two TensorCores.
    """
    b_lanes = max(_LANE, ((batch + _LANE - 1) // _LANE) * _LANE)
    cap = max(_LANE, (int(cap) // _LANE) * _LANE)
    tile = min(cap, b_lanes)
    if b_lanes >= 2 * _LANE:
        while tile > _LANE and pl.cdiv(b_lanes, tile) < 2:
            tile //= 2
        tile = max(_LANE, (tile // _LANE) * _LANE)
        g = pl.cdiv(b_lanes, tile)
        if g > 1 and g % 2 == 1 and tile > _LANE:
            half = max(_LANE, (tile // 2 // _LANE) * _LANE)
            if pl.cdiv(b_lanes, half) % 2 == 0:
                tile = half
    return tile


def my_mlp_pallas(x, w1, b1, w2, b2, w3, b3, *, batch_tile=None,
                  compute_dtype=jnp.bfloat16):
    """Forward pass of MyMLP.

    x : [B, F] float32
    wK: [inK, outK]  (transposed vs. nn.Linear's [out, in]),  bK: [outK]
    Returns [B, 1] float32.  Matmul inputs are cast to `compute_dtype` (bf16 by
    default, f32 accumulation); pass compute_dtype=jnp.float32 for full-f32
    matmuls matching the PyTorch module's math.
    """
    B, F = x.shape
    H1 = w1.shape[1]
    H2 = w2.shape[1]
    O = w3.shape[1]
    assert O == 1, "MyMLP's third layer has a single output feature"

    if batch_tile is None:
        batch_tile = _choose_batch_tile(B)
    batch_tile = max(_LANE, (int(batch_tile) // _LANE) * _LANE)
    grid = (pl.cdiv(B, batch_tile),)

    cd = jnp.dtype(compute_dtype)
    # Weights / biases: tiny, reshaped once in the wrapper, resident in VMEM.
    w1T = w1.T.astype(cd)                       # [H1, F]
    w2T = w2.T.astype(cd)                       # [H2, H1]
    w3c = w3.astype(jnp.float32)                # [H2, 1]  (f32 VPU layer)
    b1c = b1.reshape(H1, 1).astype(jnp.float32)
    b2c = b2.reshape(H2, 1).astype(jnp.float32)
    b3c = b3.reshape(1, 1).astype(jnp.float32)

    # Rough per-step VMEM footprint (per batch column) -> scoped-VMEM hint.
    bytes_per_col = (F * (4 + cd.itemsize)          # x f32 block + in-kernel cast
                     + H1 * (4 + cd.itemsize)       # h1 f32 + cd copy
                     + H2 * (4 + 4)                 # h2 f32 + w3*h2 product
                     + 8)                           # output + slack
    step_bytes = batch_tile * bytes_per_col + batch_tile * F * 4  # + 2nd x buffer
    vmem_limit = int(min(max(32 * 1024 * 1024, 2 * step_bytes), 64 * 1024 * 1024))

    flops = 2 * B * (F * H1 + H1 * H2 + H2 * O)
    bytes_accessed = (B * F * 4
                      + (w1T.size + w2T.size) * cd.itemsize
                      + (w3c.size + H1 + H2 + O) * 4
                      + B * O * 4)

    out_t = pl.pallas_call(
        _mlp_kernel,
        out_shape=jax.ShapeDtypeStruct((O, B), jnp.float32),
        grid_spec=pltpu.PrefetchScalarGridSpec(
            num_scalar_prefetch=0,
            grid=grid,
            in_specs=[
                # x tile, natural layout, streamed.  If measurement ever shows
                # the x DMA exposed, add pipeline_mode=pl.Buffered(3) here.
                pl.BlockSpec((batch_tile, F), lambda i: (i, 0)),
                pl.BlockSpec((H1, F), lambda i: (0, 0)),     # W1^T (resident)
                pl.BlockSpec((H1, 1), lambda i: (0, 0)),     # b1
                pl.BlockSpec((H2, H1), lambda i: (0, 0)),    # W2^T
                pl.BlockSpec((H2, 1), lambda i: (0, 0)),     # b2
                pl.BlockSpec((H2, 1), lambda i: (0, 0)),     # w3 column
                pl.BlockSpec((1, 1), lambda i: (0, 0)),      # b3
            ],
            out_specs=pl.BlockSpec((O, batch_tile), lambda i: (0, i)),
        ),
        compiler_params=pltpu.CompilerParams(
            dimension_semantics=("parallel",),    # batch axis shards across TCs
            vmem_limit_bytes=vmem_limit,
        ),
        cost_estimate=pl.CostEstimate(
            flops=int(flops), transcendentals=0,
            bytes_accessed=int(bytes_accessed)),
    )(x, w1T, b1c, w2T, b2c, w3c, b3c)

    return out_t.T          # [O, B] -> [B, 1] float32


def _mlp_reference(x, w1, b1, w2, b2, w3, b3, compute_dtype=jnp.bfloat16):
    """Pure-JAX reference mirroring the kernel's casts (layers 1/2 in
    compute_dtype with f32 accumulation; layer 3 in f32)."""
    cd = compute_dtype
    h1 = jnp.dot(x.astype(cd), w1.astype(cd),
                 preferred_element_type=jnp.float32) + b1.reshape(1, -1)
    h1 = jnp.maximum(h1, 0.0)
    h2 = jnp.dot(h1.astype(cd), w2.astype(cd),
                 preferred_element_type=jnp.float32) + b2.reshape(1, -1)
    h2 = jnp.maximum(h2, 0.0)
    return jnp.dot(h2, w3.astype(jnp.float32)) + b3.reshape(1, -1)


if __name__ == "__main__":
    # Small shapes consistent with MyMLP(input_features=32, h1=64, h2=32).
    batch = 8
    input_features = 32
    hidden_layer_1 = 64
    hidden_layer_2 = 32

    key = jax.random.PRNGKey(0)
    kx, k1, kb1, k2, kb2, k3, kb3 = jax.random.split(key, 7)

    x = jax.random.normal(kx, (batch, input_features), dtype=jnp.float32)

    # Deterministic parameter init (uniform, roughly matching nn.Linear's scale).
    def init_linear(kw, kb, fan_in, fan_out):
        bound = 1.0 / (fan_in ** 0.5)
        w = jax.random.uniform(kw, (fan_in, fan_out), jnp.float32, -bound, bound)
        b = jax.random.uniform(kb, (fan_out,), jnp.float32, -bound, bound)
        return w, b

    w1, b1 = init_linear(k1, kb1, input_features, hidden_layer_1)
    w2, b2 = init_linear(k2, kb2, hidden_layer_1, hidden_layer_2)
    w3, b3 = init_linear(k3, kb3, hidden_layer_2, 1)

    # Default (bf16-MXU, f32-accumulate) path, checked against a reference that
    # mirrors the same casts -- bf16 products are exact in f32, so the match is
    # tight.  NOTE: this intentionally differs from pure-f32 PyTorch math.
    out = jax.block_until_ready(my_mlp_pallas(x, w1, b1, w2, b2, w3, b3))
    ref = _mlp_reference(x, w1, b1, w2, b2, w3, b3, compute_dtype=jnp.bfloat16)
    assert out.shape == (batch, 1)
    assert bool(jnp.all(jnp.isfinite(out)))
    assert jnp.allclose(out, ref, atol=2e-3, rtol=2e-3), float(
        jnp.max(jnp.abs(out - ref)))

    # Full-f32 path (closest to the PyTorch module).  Loose tolerance because
    # XLA / Mosaic may pick different f32-matmul pass counts on different chips.
    out_f32 = jax.block_until_ready(
        my_mlp_pallas(x, w1, b1, w2, b2, w3, b3, compute_dtype=jnp.float32))
    ref_f32 = _mlp_reference(x, w1, b1, w2, b2, w3, b3, compute_dtype=jnp.float32)
    assert out_f32.shape == (batch, 1)
    assert jnp.allclose(out_f32, ref_f32, atol=2e-2, rtol=2e-2), float(
        jnp.max(jnp.abs(out_f32 - ref_f32)))

    print("KERNEL_OK")
</pallas_src>

<mosaic_0001>
module attributes {stable_mosaic.version = 11 : i64} {
  func.func @_mlp_kernel(%arg0: i32, %arg1: memref<128x32xf32, #tpu.memory_space<vmem>>, %arg2: memref<64x32xbf16, #tpu.memory_space<vmem>>, %arg3: memref<64x1xf32, #tpu.memory_space<vmem>>, %arg4: memref<32x64xbf16, #tpu.memory_space<vmem>>, %arg5: memref<32x1xf32, #tpu.memory_space<vmem>>, %arg6: memref<32x1xf32, #tpu.memory_space<vmem>>, %arg7: memref<1x1xf32, #tpu.memory_space<vmem>>, %arg8: memref<1x128xf32, #tpu.memory_space<vmem>>) attributes {dimension_semantics = [#tpu.dimension_semantics<parallel>], iteration_bounds = array<i64: 1>, scalar_prefetch = 0 : i64, scratch_operands = 0 : i64, tpu.core_type = #tpu.core_type<tc>, window_params = [{transform_indices = @transform_0, window_bounds = array<i64: 128, 32>}, {pipeline_mode = #tpu.pipeline_mode<synchronous>, transform_indices = @transform_1, window_bounds = array<i64: 64, 32>}, {pipeline_mode = #tpu.pipeline_mode<synchronous>, transform_indices = @transform_2, window_bounds = array<i64: 64, 1>}, {pipeline_mode = #tpu.pipeline_mode<synchronous>, transform_indices = @transform_3, window_bounds = array<i64: 32, 64>}, {pipeline_mode = #tpu.pipeline_mode<synchronous>, transform_indices = @transform_4, window_bounds = array<i64: 32, 1>}, {pipeline_mode = #tpu.pipeline_mode<synchronous>, transform_indices = @transform_5, window_bounds = array<i64: 32, 1>}, {pipeline_mode = #tpu.pipeline_mode<synchronous>, transform_indices = @transform_6, window_bounds = array<i64: 1, 1>}, {transform_indices = @transform_7, window_bounds = array<i64: 1, 128>}]} {
    %c0 = arith.constant 0 : index
    %c0_0 = arith.constant 0 : index
    %0 = vector.load %arg1[%c0, %c0_0] : memref<128x32xf32, #tpu.memory_space<vmem>>, vector<128x32xf32>
    %1 = arith.truncf %0 : vector<128x32xf32> to vector<128x32xbf16>
    %c0_1 = arith.constant 0 : index
    %c0_2 = arith.constant 0 : index
    %2 = vector.load %arg2[%c0_1, %c0_2] : memref<64x32xbf16, #tpu.memory_space<vmem>>, vector<64x32xbf16>
    %cst = arith.constant dense<0.000000e+00> : vector<64x128xf32>
    %3 = tpu.matmul %2, %1, %cst {dimension_numbers = #tpu.dot_dimension_numbers<[1], [1], [0], [0], [0, 0, 1, 0], [], []>} : vector<64x32xbf16>, vector<128x32xbf16>, vector<64x128xf32> -> vector<64x128xf32>
    %c0_3 = arith.constant 0 : index
    %c0_4 = arith.constant 0 : index
    %4 = vector.load %arg3[%c0_3, %c0_4] : memref<64x1xf32, #tpu.memory_space<vmem>>, vector<64x1xf32>
    %5 = vector.broadcast %4 : vector<64x1xf32> to vector<64x128xf32>
    %6 = arith.addf %3, %5 : vector<64x128xf32>
    %cst_5 = arith.constant 0.000000e+00 : f32
    %7 = vector.broadcast %cst_5 : f32 to vector<64x128xf32>
    %8 = arith.maximumf %6, %7 : vector<64x128xf32>
    %c0_6 = arith.constant 0 : index
    %c0_7 = arith.constant 0 : index
    %9 = vector.load %arg4[%c0_6, %c0_7] : memref<32x64xbf16, #tpu.memory_space<vmem>>, vector<32x64xbf16>
    %10 = arith.truncf %8 : vector<64x128xf32> to vector<64x128xbf16>
    %cst_8 = arith.constant dense<0.000000e+00> : vector<32x128xf32>
    %11 = tpu.matmul %9, %10, %cst_8 {dimension_numbers = #tpu.dot_dimension_numbers<[1], [0], [0], [1], [0, 0, 1, 1], [], []>} : vector<32x64xbf16>, vector<64x128xbf16>, vector<32x128xf32> -> vector<32x128xf32>
    %c0_9 = arith.constant 0 : index
    %c0_10 = arith.constant 0 : index
    %12 = vector.load %arg5[%c0_9, %c0_10] : memref<32x1xf32, #tpu.memory_space<vmem>>, vector<32x1xf32>
    %13 = vector.broadcast %12 : vector<32x1xf32> to vector<32x128xf32>
    %14 = arith.addf %11, %13 : vector<32x128xf32>
    %cst_11 = arith.constant 0.000000e+00 : f32
    %15 = vector.broadcast %cst_11 : f32 to vector<32x128xf32>
    %16 = arith.maximumf %14, %15 : vector<32x128xf32>
    %c0_12 = arith.constant 0 : index
    %c0_13 = arith.constant 0 : index
    %17 = vector.load %arg6[%c0_12, %c0_13] : memref<32x1xf32, #tpu.memory_space<vmem>>, vector<32x1xf32>
    %18 = vector.broadcast %17 : vector<32x1xf32> to vector<32x128xf32>
    %19 = arith.mulf %18, %16 : vector<32x128xf32>
    %cst_14 = arith.constant dense<0.000000e+00> : vector<128xf32>
    %20 = vector.multi_reduction <add>, %19, %cst_14 [0] : vector<32x128xf32> to vector<128xf32>
    %21 = vector.shape_cast %20 : vector<128xf32> to vector<1x128xf32>
    %c0_15 = arith.constant 0 : index
    %c0_16 = arith.constant 0 : index
    %22 = vector.load %arg7[%c0_15, %c0_16] : memref<1x1xf32, #tpu.memory_space<vmem>>, vector<1x1xf32>
    %23 = vector.broadcast %22 : vector<1x1xf32> to vector<1x128xf32>
    %24 = arith.addf %21, %23 : vector<1x128xf32>
    %c0_17 = arith.constant 0 : index
    %c0_18 = arith.constant 0 : index
    %25 = vector.load %arg8[%c0_17, %c0_18] : memref<1x128xf32, #tpu.memory_space<vmem>>, vector<1x128xf32>
    tpu.vector_store %arg8[%c0_17, %c0_18], %24 {strides = array<i32>} : memref<1x128xf32, #tpu.memory_space<vmem>>, vector<1x128xf32>,
    return
  }
  func.func @transform_0(%arg0: i32) -> (i32, i32) {
    %c0_i32 = arith.constant 0 : i32
    %c0_i32_0 = arith.constant 0 : i32
    return %arg0, %c0_i32 : i32, i32
  }
  func.func @transform_1(%arg0: i32) -> (i32, i32) {
    %c0_i32 = arith.constant 0 : i32
    %c0_i32_0 = arith.constant 0 : i32
    %c0_i32_1 = arith.constant 0 : i32
    return %c0_i32, %c0_i32_0 : i32, i32
  }
  func.func @transform_2(%arg0: i32) -> (i32, i32) {
    %c0_i32 = arith.constant 0 : i32
    %c0_i32_0 = arith.constant 0 : i32
    %c0_i32_1 = arith.constant 0 : i32
    return %c0_i32, %c0_i32_0 : i32, i32
  }
  func.func @transform_3(%arg0: i32) -> (i32, i32) {
    %c0_i32 = arith.constant 0 : i32
    %c0_i32_0 = arith.constant 0 : i32
    %c0_i32_1 = arith.constant 0 : i32
    return %c0_i32, %c0_i32_0 : i32, i32
  }
  func.func @transform_4(%arg0: i32) -> (i32, i32) {
    %c0_i32 = arith.constant 0 : i32
    %c0_i32_0 = arith.constant 0 : i32
    %c0_i32_1 = arith.constant 0 : i32
    return %c0_i32, %c0_i32_0 : i32, i32
  }
  func.func @transform_5(%arg0: i32) -> (i32, i32) {
    %c0_i32 = arith.constant 0 : i32
    %c0_i32_0 = arith.constant 0 : i32
    %c0_i32_1 = arith.constant 0 : i32
    return %c0_i32, %c0_i32_0 : i32, i32
  }
  func.func @transform_6(%arg0: i32) -> (i32, i32) {
    %c0_i32 = arith.constant 0 : i32
    %c0_i32_0 = arith.constant 0 : i32
    %c0_i32_1 = arith.constant 0 : i32
    return %c0_i32, %c0_i32_0 : i32, i32
  }
  func.func @transform_7(%arg0: i32) -> (i32, i32) {
    %c0_i32 = arith.constant 0 : i32
    %c0_i32_0 = arith.constant 0 : i32
    return %c0_i32, %arg0 : i32, i32
  }
}

</mosaic_0001>

<bundles_post_ra>
// kernel: tpu_custom_call.1
= control target key start
LH: loop header
LB: loop body
LE: loop exit
PB: predicated region body
PF: predicated region fallthrough
CT: control target
= control target key end

     0   :  { %s595_s0 = inlined_call_operand.vmem [shape: f32[8,32], index: 0, kind: input, shape index: {}]   ;;  %s596_s1 = inlined_call_operand.vmem [shape: bf16[64,32], index: 1, kind: input, shape index: {}]   ;;  %s597_s2 = inlined_call_operand.vmem [shape: f32[64,1], index: 2, kind: input, shape index: {}]   ;;  %s598_s3 = inlined_call_operand.vmem [shape: bf16[32,64], index: 3, kind: input, shape index: {}]   ;;  %s599_s4 = inlined_call_operand.vmem [shape: f32[32,1], index: 4, kind: input, shape index: {}]   ;;  %s600_s5 = inlined_call_operand.vmem [shape: f32[32,1], index: 5, kind: input, shape index: {}]   ;;  %s601_s6 = inlined_call_operand.<no memory space> [shape: f32[1,1], index: 6, kind: input, shape index: {}]   ;;  %s602_s7 = inlined_call_operand.hbm [shape: f32[1,8], index: 7, kind: output, shape index: {}]  }
   0x1   :  { %v12_v0 = vstv %s601_s6 }
   0x2   :  { %13 = vst [vmem:[#allocation2] sm:$0x1] %v12_v0 }
   0x3   :  { %v44_v1 = vld [vmem:[%s595_s0 + $0x70] sm:$0xff]  ;;  %v45_v2 = vld [vmem:[%s595_s0 + $0x78] sm:$0xff]  ;;  %vm130_vm0 = vcmask 261120   ;;  %v42_v4 = vld [vmem:[%s595_s0 + $0x60] sm:$0xff] }
   0x4   :  { %v53_v3 = vpack.c.bf16 %v45_v2, %v44_v1  ;;  %v43_v5 = vld [vmem:[%s595_s0 + $0x68] sm:$0xff] }
   0x6   :  { %v165_v6 = vsel %vm130_vm0, %v53_v3, 0 }
   0x7   :  { %14 = vsyncpa [#allocation4], 0  ;;  %375 = vmatpush.bf16.xpose.msra.mxu3 %v165_v6  ;;  %167 = vmatpush.bf16.xpose.msra.mxu0 %v165_v6  ;;  %v52_v7 = vpack.c.bf16 %v43_v5, %v42_v4  ;;  %v40_v9 = vld [vmem:[%s595_s0 + $0x50] sm:$0xff]  ;;  %v41_v10 = vld [vmem:[%s595_s0 + $0x58] sm:$0xff]  ;;  %v421_v17 = vmov 0   ;;  %vm246_vm1 = vcmask 523264  }
   0x8   :  { %374 = vmatpush.bf16.xpose.msra.mxu2 %v165_v6  ;;  %v51_v11 = vpack.c.bf16 %v41_v10, %v40_v9  ;;  %v38_v13 = vld [vmem:[%s595_s0 + $0x40] sm:$0xff]  ;;  %v39_v14 = vld [vmem:[%s595_s0 + $0x48] sm:$0xff]  ;;  %v68_v15 = vld [vmem:[%s597_s2 + $0x30] sm:$0xff]  ;;  %392 = vset.pattern.permute.xlu0 %v421_v17 }
   0x9   :  { %v162_v8 = vsel %vm130_vm0, %v52_v7, 0  ;;  %v50_v16 = vpack.c.bf16 %v39_v14, %v38_v13  ;;  %102 = vperm.xlu0 %392, %v68_v15   ;;  %393 = vset.pattern.permute.xlu1 %v421_v17  ;;  %v36_v19 = vld [vmem:[%s595_s0 + $0x30] sm:$0xff]  ;;  %v37_v20 = vld [vmem:[%s595_s0 + $0x38] sm:$0xff]  ;;  %v66_v21 = vld [vmem:[%s597_s2 + $0x20] sm:$0xff] }
   0xa   :  { %v159_v12 = vsel %vm130_vm0, %v51_v11, 0  ;;  %394 = vset.pattern.permute.xlu2 %v421_v17  ;;  %v49_v22 = vpack.c.bf16 %v37_v20, %v36_v19  ;;  %92 = vperm.xlu1 %393, %v66_v21   ;;  %v34_v24 = vld [vmem:[%s595_s0 + $0x20] sm:$0xff]  ;;  %v35_v25 = vld [vmem:[%s595_s0 + $0x28] sm:$0xff]  ;;  %v69_v26 = vld [vmem:[%s597_s2 + $0x38] sm:$0xff] }
   0xb   :  { %v156_v18 = vsel %vm130_vm0, %v50_v16, 0  ;;  %v67_v27 = vld [vmem:[%s597_s2 + $0x28] sm:$0xff]  ;;  %v48_v28 = vpack.c.bf16 %v35_v25, %v34_v24  ;;  %v32_v30 = vld [vmem:[%s595_s0 + $0x10] sm:$0xff]  ;;  %v33_v31 = vld [vmem:[%s595_s0 + $0x18] sm:$0xff] }
   0xc   :  { %v153_v23 = vsel %vm130_vm0, %v49_v22, 0  ;;  %v62_v32 = vld [vmem:[%s597_s2] sm:$0xff]  ;;  %v63_v33 = vld [vmem:[%s597_s2 + $0x8] sm:$0xff]  ;;  %v47_v34 = vpack.c.bf16 %v33_v31, %v32_v30  ;;  %v214_v39 = vld [vmem:[%s599_s4 + $0x10] sm:$0xff] }
   0xd   :  { %v150_v29 = vsel %vm130_vm0, %v48_v28, 0  ;;  %v30_v36 = vld [vmem:[%s595_s0] sm:$0xff]  ;;  %v31_v37 = vld [vmem:[%s595_s0 + $0x8] sm:$0xff]  ;;  %v64_v40 = vld [vmem:[%s597_s2 + $0x10] sm:$0xff]  ;;  %s329_s0 = sshll.u32 %s602_s7, 4  ;;  %s330_s0 = int_to_ptr.hbm [resolvable:$true] %s329_s0 }
   0xe   :  { %v147_v35 = vsel %vm130_vm0, %v47_v34, 0  ;;  %v213_v38 = vld [vmem:[%s599_s4 + $0x8] sm:$0xff]  ;;  %v46_v41 = vpack.c.bf16 %v31_v37, %v30_v36  ;;  %82 = vperm.xlu2 %394, %v64_v40   ;;  %v276_v43 = vld [vmem:[%s600_s5] sm:$0xff]  ;;  %v65_v45 = vld [vmem:[%s597_s2 + $0x18] sm:$0xff] }
   0xf   :  { %377 = vmatpush.bf16.xpose.msra.mxu3 %v162_v8  ;;  %168 = vmatpush.bf16.xpose.msra.mxu0 %v162_v8  ;;  %v277_v44 = vld [vmem:[%s600_s5 + $0x8] sm:$0xff]  ;;  %v370_v46 = vld [vmem:[%s596_s1 + $0x10] sm:$0xff]  ;;  %v368_v47 = vld [vmem:[%s596_s1] sm:$0xff] }
  0x10   :  { %376 = vmatpush.bf16.xpose.msra.mxu2 %v162_v8  ;;  %v144_v42 = vsel %vm130_vm0, %v46_v41, 0  ;;  %v369_v48 = vld [vmem:[%s596_s1 + $0x8] sm:$0xff]  ;;  %v279_v49 = vld [vmem:[%s600_s5 + $0x18] sm:$0xff]  ;;  %v313_v50 = vld [vmem:[#allocation2] sm:$0x1] }
  0x11   :  { %107 = vperm.xlu0 %392, %v69_v26   ;;  %v212_v51 = vld [vmem:[%s599_s4] sm:$0xff]  ;;  %v215_v52 = vld [vmem:[%s599_s4 + $0x18] sm:$0xff]  ;;  %v278_v54 = vld [vmem:[%s600_s5 + $0x10] sm:$0xff] }
  0x12   :  { %97 = vperm.xlu1 %393, %v67_v27   ;;  %v371_v53 = vld [vmem:[%s596_s1 + $0x18] sm:$0xff]  ;;  %v372_v27 = vld [vmem:[%s598_s3] sm:$0xff]  ;;  %v373_v28 = vld [vmem:[%s598_s3 + $0x8] sm:$0xff]  ;;  %s422_s3 = smov [#allocation3]  }
  0x13   :  { %s327_s25 = sshll.u32 %s422_s3, 4  ;;  %s328_s25 = int_to_ptr.vmem [resolvable:$true] %s327_s25 }
  0x16   :  { %87 = vperm.xlu2 %394, %v65_v45  }
  0x17   :  { %379 = vmatpush.bf16.xpose.msra.mxu3 %v159_v12  ;;  %169 = vmatpush.bf16.xpose.msra.mxu0 %v159_v12 }
  0x18   :  { %378 = vmatpush.bf16.xpose.msra.mxu2 %v159_v12 }
  0x19   :  { %72 = vperm.xlu0 %392, %v62_v32  }
  0x1a   :  { %77 = vperm.xlu1 %393, %v63_v33  }
  0x1e   :  { %218 = vperm.xlu2 %394, %v212_v51  }
  0x1f   :  { %381 = vmatpush.bf16.xpose.msra.mxu3 %v156_v18  ;;  %170 = vmatpush.bf16.xpose.msra.mxu0 %v156_v18 }
  0x20   :  { %380 = vmatpush.bf16.xpose.msra.mxu2 %v156_v18 }
  0x21   :  { %223 = vperm.xlu0 %392, %v213_v38  }
  0x22   :  { %228 = vperm.xlu1 %393, %v214_v39  }
  0x26   :  { %233 = vperm.xlu2 %394, %v215_v52  }
  0x27   :  { %383 = vmatpush.bf16.xpose.msra.mxu3 %v153_v23  ;;  %171 = vmatpush.bf16.xpose.msra.mxu0 %v153_v23 }
  0x28   :  { %382 = vmatpush.bf16.xpose.msra.mxu2 %v153_v23 }
  0x29   :  { %282 = vperm.xlu0 %392, %v276_v43  }
  0x2a   :  { %287 = vperm.xlu1 %393, %v277_v44  }
  0x2e   :  { %292 = vperm.xlu2 %394, %v278_v54  }
  0x2f   :  { %385 = vmatpush.bf16.xpose.msra.mxu3 %v150_v29  ;;  %172 = vmatpush.bf16.xpose.msra.mxu0 %v150_v29 }
  0x30   :  { %384 = vmatpush.bf16.xpose.msra.mxu2 %v150_v29 }
  0x31   :  { %297 = vperm.xlu0 %392, %v279_v49  }
  0x32   :  { %316 = vperm.xlu1 %393, %v313_v50  }
  0x37   :  { %387 = vmatpush.bf16.xpose.msra.mxu3 %v147_v35  ;;  %173 = vmatpush.bf16.xpose.msra.mxu0 %v147_v35 }
  0x38   :  { %386 = vmatpush.bf16.xpose.msra.mxu2 %v147_v35 }
  0x3f   :  { %389 = vmatpush.bf16.xpose.msra.mxu3 %v144_v42  ;;  %174 = vmatpush.bf16.xpose.msra.mxu0 %v144_v42 }
  0x40   :  { %388 = vmatpush.bf16.xpose.msra.mxu2 %v144_v42 }
  0x46   :  { %356 = vmatmul.msk.bf16.vlgmr.msra.gmra.mxu3 %vm130_vm0, %v370_v46  ;;  %354 = vmatmul.msk.bf16.vlgmr.msra.gmra.mxu0 %vm130_vm0, %v368_v47 }
  0x47   :  { %355 = vmatmul.msk.bf16.vlgmr.msra.gmra.mxu2 %vm130_vm0, %v369_v48 }
  0x56   :  { %357 = vmatmul.msk.bf16.gmra.mxu3 %vm130_vm0, %v371_v53 }
  0x68   :  { %v83_v61 = vpop.permute.xlu2 %82 }
  0x70   :  { %v88_v9 = vpop.permute.xlu2 %87 }
  0x78   :  { %v219_v30 = vpop.permute.xlu2 %218 }
  0x7b   :  { %v103_v57 = vpop.permute.xlu0 %102 }
  0x7c   :  { %v93_v58 = vpop.permute.xlu1 %92 }
  0x80   :  { %v234_v34 = vpop.permute.xlu2 %233 }
  0x83   :  { %v108_v63 = vpop.permute.xlu0 %107 }
  0x84   :  { %v98_v0 = vpop.permute.xlu1 %97 }
  0x88   :  { %v293_v45 = vpop.permute.xlu2 %292 }
  0x8b   :  { %v73_v15 = vpop.permute.xlu0 %72 }
  0x8c   :  { %v78_v17 = vpop.permute.xlu1 %77 }
  0x93   :  { %v224_v31 = vpop.permute.xlu0 %223 }
  0x94   :  { %v229_v33 = vpop.permute.xlu1 %228 }
  0x9b   :  { %v283_v39 = vpop.permute.xlu0 %282 }
  0x9c   :  { %v288_v43 = vpop.permute.xlu1 %287 }
  0xa3   :  { %v298_v52 = vpop.permute.xlu0 %297 }
  0xc3   :  { %v176_v62 = vpop.f32.mrf.mxu0 }
  0xc4   :  { %v177_v18 = vadd.f32 %v176_v62, %v73_v15 }
  0xc6   :  { %v196_v23 = vmax.f32 %v177_v18, 0.0 }
  0xc9   :  { %v186_v55 = vpop.f32.mrf.mxu3 }
  0xca   :  { %v181_v59 = vpop.f32.mrf.mxu2  ;;  %v187_v6 = vadd.f32 %v186_v55, %v93_v58 }
  0xcb   :  { %v182_v11 = vadd.f32 %v181_v59, %v83_v61  ;;  %v178_v14 = vpop.f32.mrf.mxu0 }
  0xcc   :  { %v200_v16 = vmax.f32 %v187_v6, 0.0  ;;  %v179_v19 = vadd.f32 %v178_v14, %v78_v17 }
  0xcd   :  { %v198_v20 = vmax.f32 %v182_v11, 0.0 }
  0xce   :  { %v197_v24 = vmax.f32 %v179_v19, 0.0 }
  0xd0   :  { %v208_v26 = vpack.c.bf16 %v197_v24, %v196_v23 }
  0xd1   :  { %v188_v56 = vpop.f32.mrf.mxu3 }
  0xd2   :  { %v189_v3 = vadd.f32 %v188_v56, %v98_v0  ;;  %v183_v5 = vpop.f32.mrf.mxu2 }
  0xd3   :  { %v184_v12 = vadd.f32 %v183_v5, %v88_v9 }
  0xd4   :  { %v201_v10 = vmax.f32 %v189_v3, 0.0 }
  0xd5   :  { %v199_v21 = vmax.f32 %v184_v12, 0.0 }
  0xd6   :  { %v210_v22 = vpack.c.bf16 %v201_v10, %v200_v16 }
  0xd7   :  { %v209_v25 = vpack.c.bf16 %v199_v21, %v198_v20 }
  0xd9   :  { %v191_v60 = vpop.f32.mrf.mxu3 }
  0xda   :  { %v192_v1 = vadd.f32 %v191_v60, %v103_v57  ;;  %v317_v60 = vpop.permute.xlu1 %316 }
  0xdb   :  { %v319_v62 = vperm.slane %v317_v60, 0 }
  0xdc   :  { %v202_v7 = vmax.f32 %v192_v1, 0.0 }
  0xe1   :  { %v193_v2 = vpop.f32.mrf.mxu3 }
  0xe2   :  { %v194_v4 = vadd.f32 %v193_v2, %v108_v63 }
  0xe4   :  { %v203_v8 = vmax.f32 %v194_v4, 0.0 }
  0xe6   :  { %v211_v13 = vpack.c.bf16 %v203_v8, %v202_v7 }
  0xe8   :  { %257 = vmatpush.bf16.msra.mxu1 %v211_v13 }
  0xec   :  { %258 = vmatpush.bf16.msra.mxu1 %v210_v22 }
  0xf0   :  { %259 = vmatpush.bf16.msra.mxu1 %v209_v25 }
  0xf4   :  { %260 = vmatpush.bf16.msra.mxu1 %v208_v26 }
  0xf7   :  { %366 = vmatmul.msk.bf16.vlgmr.msra.gmra.mxu1 %vm246_vm1, %v372_v27 }
 0x107   :  { %367 = vmatmul.msk.bf16.gmra.mxu1 %vm246_vm1, %v373_v28 }
 0x174   :  { %v262_v29 = vpop.f32.mrf.mxu1 }
 0x175   :  { %v263_v37 = vadd.f32 %v262_v29, %v219_v30 }
 0x177   :  { %v272_v41 = vmax.f32 %v263_v37, 0.0 }
 0x179   :  { %v300_v47 = vmul.f32 %v283_v39, %v272_v41 }
 0x17c   :  { %v264_v32 = vpop.f32.mrf.mxu1 }
 0x17d   :  { %v265_v35 = vadd.f32 %v264_v32, %v224_v31 }
 0x17f   :  { %v273_v40 = vmax.f32 %v265_v35, 0.0 }
 0x181   :  { %v301_v44 = vmul.f32 %v288_v43, %v273_v40 }
 0x183   :  { %v304_v50 = vadd.f32 %v301_v44, %v300_v47 }
 0x184   :  { %v267_v36 = vpop.f32.mrf.mxu1 }
 0x185   :  { %v268_v38 = vadd.f32 %v267_v36, %v229_v33 }
 0x187   :  { %v274_v42 = vmax.f32 %v268_v38, 0.0 }
 0x189   :  { %v302_v48 = vmul.f32 %v293_v45, %v274_v42 }
 0x18b   :  { %v305_v53 = vadd.f32 %v304_v50, %v302_v48 }
 0x18c   :  { %v269_v46 = vpop.f32.mrf.mxu1 }
 0x18d   :  { %v270_v49 = vadd.f32 %v269_v46, %v234_v34 }
 0x18f   :  { %v275_v51 = vmax.f32 %v270_v49, 0.0 }
 0x191   :  { %v303_v54 = vmul.f32 %v298_v52, %v275_v51 }
 0x193   :  { %v306_v55 = vadd.f32 %v305_v53, %v303_v54 }
 0x195   :  { %v307_v56 = vrot.slane %v306_v55, 4 }
 0x197   :  { %v308_v57 = vadd.f32 %v307_v56, %v306_v55 }
 0x199   :  { %v309_v58 = vrot.slane %v308_v57, 2 }
 0x19b   :  { %v310_v59 = vadd.f32 %v309_v58, %v308_v57 }
 0x19d   :  { %v311_v61 = vrot.slane %v310_v59, 1 }
 0x19f   :  { %v312_v63 = vadd.f32 %v311_v61, %v310_v59 }
 0x1a1   :  { %v320_v0 = vadd.f32 %v319_v62, %v312_v63 }
 0x1a3   :  { %321 = vst [vmem:[#allocation3] sm:$0x1] %v320_v0 }
 0x1a4   :  { %332 = dma.vmem_to_hbm [thread:$0]  %s328_s25, 16, %s330_s0, [#allocation4]  }
 0x1a5   :  { %419 = dma.done.wait [#allocation4], 16  }
 0x1a6   :  { %420 = vsyncadd [#allocation4], 4294967280 }
 0x1a7   :  { %337 = vsyncpa [#allocation4], 1 }

</bundles_post_ra>
